<compile_context>
chip_gen: v7x
topology: tpu7x:2x2x1
jax: 0.10.0
libtpu: 0.0.40
codegen_flags: <defaults>
</compile_context>

<pallas_src>
import numpy as np
import jax
import jax.numpy as jnp
from jax.experimental import pallas as pl
from jax.experimental.pallas import tpu as pltpu


def _gconv_kernel(x_ref, w_ref, b_ref, o_ref):
    # x_ref: (1, C_in, tv)  w_ref: (C_out, C_in)  b_ref: (C_out, 1)  o_ref: (1, C_out, tv)
    acc = jnp.dot(w_ref[...], x_ref[0], preferred_element_type=jnp.float32)
    o_ref[0] = (acc + b_ref[...]).astype(o_ref.dtype)


def _gconv_mask_kernel(x_ref, w_ref, b_ref, m_ref, o_ref):
    # m_ref: (1, 1, tv) -> (1, tv): lane-dense, broadcast over the C_out sublanes.
    acc = jnp.dot(w_ref[...], x_ref[0], preferred_element_type=jnp.float32)
    o_ref[0] = ((acc + b_ref[...]) * m_ref[0]).astype(o_ref.dtype)


def _pick_tv_tile(tv, cap=2048):
    """Largest multiple of 128 that divides tv, capped at `cap`.

    Falls back to the full spatial extent when tv is not a multiple of 128
    (block == full dim is always legal; fine for small graphs).
    """
    if tv % 128 == 0:
        tile = min(tv, cap)
        while tv % tile != 0:
            tile -= 128
        return tile
    return tv


def conv_temporal_graphical(x, A, weight, bias=None, mask=None, *, tv_cap=2048):
    """Pallas implementation of ConvTemporalGraphical.forward.

    x:      (N, C_in, T, V)
    A:      (K, V, V)             returned unchanged
    weight: (C_out, C_in, 1, 1)   (nn.Conv2d weight, t_kernel_size=1)
    bias:   (C_out,) or None
    mask:   optional (N, T, V)
    returns (out, A) with out: (N, C_out, T, V)
    """
    N, C_in, T, V = x.shape
    C_out = weight.shape[0]
    TV = T * V
    tv_tile = _pick_tv_tile(TV, tv_cap)
    grid = (N, TV // tv_tile)

    # Free reshapes only (contiguous dim merges) — no HBM transpose passes.
    x3 = x.reshape(N, C_in, TV)
    w2d = weight.reshape(C_out, C_in).astype(x.dtype)
    if bias is None:
        b2d = jnp.zeros((C_out, 1), dtype=x.dtype)
    else:
        b2d = bias.reshape(C_out, 1).astype(x.dtype)

    x_spec = pl.BlockSpec((1, C_in, tv_tile), lambda n, j: (n, 0, j))
    w_spec = pl.BlockSpec((C_out, C_in), lambda n, j: (0, 0))
    b_spec = pl.BlockSpec((C_out, 1), lambda n, j: (0, 0))
    o_spec = pl.BlockSpec((1, C_out, tv_tile), lambda n, j: (n, 0, j))
    out_shape = jax.ShapeDtypeStruct((N, C_out, TV), x.dtype)

    itemsize = jnp.dtype(x.dtype).itemsize
    flops = 2 * N * C_out * C_in * TV
    bytes_accessed = (N * C_in * TV + C_out * C_in + C_out + N * C_out * TV) * itemsize

    compiler_params = pltpu.CompilerParams(
        dimension_semantics=("parallel", "parallel"))

    if mask is None:
        out3 = pl.pallas_call(
            _gconv_kernel,
            out_shape=out_shape,
            grid_spec=pltpu.PrefetchScalarGridSpec(
                num_scalar_prefetch=0,
                grid=grid,
                in_specs=[x_spec, w_spec, b_spec],
                out_specs=o_spec),
            compiler_params=compiler_params,
            cost_estimate=pl.CostEstimate(
                flops=flops, transcendentals=0, bytes_accessed=bytes_accessed),
        )(x3, w2d, b2d)
    else:
        m3 = mask.reshape(N, 1, TV).astype(x.dtype)   # lane-dense mask rows
        m_spec = pl.BlockSpec((1, 1, tv_tile), lambda n, j: (n, 0, j))
        bytes_accessed += N * TV * itemsize
        out3 = pl.pallas_call(
            _gconv_mask_kernel,
            out_shape=out_shape,
            grid_spec=pltpu.PrefetchScalarGridSpec(
                num_scalar_prefetch=0,
                grid=grid,
                in_specs=[x_spec, w_spec, b_spec, m_spec],
                out_specs=o_spec),
            compiler_params=compiler_params,
            cost_estimate=pl.CostEstimate(
                flops=flops, transcendentals=0, bytes_accessed=bytes_accessed),
        )(x3, w2d, b2d, m3)

    out = out3.reshape(N, C_out, T, V)   # free reshape (split of last dim)
    return out, A


def _reference(x, A, weight, bias, mask=None):
    # Pure-JAX reference of the PyTorch forward (1x1 conv == channel matmul).
    w2d = weight.reshape(weight.shape[0], weight.shape[1])                # (C_out, C_in)
    out = jnp.einsum('nctv,oc->notv', x, w2d)
    if bias is not None:
        out = out + bias[None, :, None, None]
    if mask is not None:
        out = jnp.einsum('nctv,ntv->nctv', out, mask)
    return out, A


if __name__ == "__main__":
    key = jax.random.PRNGKey(0)
    k_x, k_w, k_b, k_m, k_a = jax.random.split(key, 5)

    # Small shapes consistent with (N, C_in, T, V) input and graph kernel size K.
    N, C_in, C_out, T, V, K = 2, 8, 32, 8, 16, 3

    x = jax.random.normal(k_x, (N, C_in, T, V), dtype=jnp.float32)
    A = jax.random.normal(k_a, (K, V, V), dtype=jnp.float32)
    mask = jax.random.uniform(k_m, (N, T, V), dtype=jnp.float32)

    # nn.Conv2d-style init, deterministic (shapes: (C_out, C_in, 1, 1), (C_out,))
    fan_in = C_in
    bound = 1.0 / np.sqrt(fan_in)
    weight = jax.random.uniform(k_w, (C_out, C_in, 1, 1), dtype=jnp.float32,
                                minval=-bound, maxval=bound)
    bias = jax.random.uniform(k_b, (C_out,), dtype=jnp.float32,
                              minval=-bound, maxval=bound)

    # With mask.
    out_m, A_m = conv_temporal_graphical(x, A, weight, bias, mask=mask)
    out_m = jax.block_until_ready(out_m)
    ref_m, _ = _reference(x, A, weight, bias, mask=mask)
    assert out_m.shape == (N, C_out, T, V)
    assert np.allclose(np.asarray(out_m), np.asarray(ref_m), rtol=1e-5, atol=1e-5)
    assert np.array_equal(np.asarray(A_m), np.asarray(A))

    # Without mask (separate kernel variant, no mask DMA / multiply).
    out_nm, A_nm = conv_temporal_graphical(x, A, weight, bias, mask=None)
    out_nm = jax.block_until_ready(out_nm)
    ref_nm, _ = _reference(x, A, weight, bias, mask=None)
    assert np.allclose(np.asarray(out_nm), np.asarray(ref_nm), rtol=1e-5, atol=1e-5)
    assert np.array_equal(np.asarray(A_nm), np.asarray(A))

    print("KERNEL_OK")
</pallas_src>

<mosaic_0001>
module attributes {stable_mosaic.version = 11 : i64} {
  func.func @_gconv_mask_kernel(%arg0: i32, %arg1: i32, %arg2: memref<1x8x128xf32, #tpu.memory_space<vmem>>, %arg3: memref<32x8xf32, #tpu.memory_space<vmem>>, %arg4: memref<32x1xf32, #tpu.memory_space<vmem>>, %arg5: memref<1x1x128xf32, #tpu.memory_space<vmem>>, %arg6: memref<1x32x128xf32, #tpu.memory_space<vmem>>) attributes {dimension_semantics = [#tpu.dimension_semantics<parallel>, #tpu.dimension_semantics<parallel>], iteration_bounds = array<i64: 2, 1>, scalar_prefetch = 0 : i64, scratch_operands = 0 : i64, tpu.core_type = #tpu.core_type<tc>, window_params = [{transform_indices = @transform_0, window_bounds = array<i64: 1, 8, 128>}, {pipeline_mode = #tpu.pipeline_mode<synchronous>, transform_indices = @transform_1, window_bounds = array<i64: 32, 8>}, {pipeline_mode = #tpu.pipeline_mode<synchronous>, transform_indices = @transform_2, window_bounds = array<i64: 32, 1>}, {transform_indices = @transform_3, window_bounds = array<i64: 1, 1, 128>}, {transform_indices = @transform_4, window_bounds = array<i64: 1, 32, 128>}]} {
    %c0 = arith.constant 0 : index
    %c0_0 = arith.constant 0 : index
    %0 = vector.load %arg3[%c0, %c0_0] : memref<32x8xf32, #tpu.memory_space<vmem>>, vector<32x8xf32>
    %c0_1 = arith.constant 0 : index
    %c0_2 = arith.constant 0 : index
    %c0_3 = arith.constant 0 : index
    %1 = vector.load %arg2[%c0_1, %c0_2, %c0_3] : memref<1x8x128xf32, #tpu.memory_space<vmem>>, vector<1x8x128xf32>
    %2 = vector.shape_cast %1 : vector<1x8x128xf32> to vector<8x128xf32>
    %cst = arith.constant dense<0.000000e+00> : vector<32x128xf32>
    %3 = tpu.matmul %0, %2, %cst {dimension_numbers = #tpu.dot_dimension_numbers<[1], [0], [0], [1], [0, 0, 1, 1], [], []>} : vector<32x8xf32>, vector<8x128xf32>, vector<32x128xf32> -> vector<32x128xf32>
    %c0_4 = arith.constant 0 : index
    %c0_5 = arith.constant 0 : index
    %4 = vector.load %arg4[%c0_4, %c0_5] : memref<32x1xf32, #tpu.memory_space<vmem>>, vector<32x1xf32>
    %5 = vector.broadcast %4 : vector<32x1xf32> to vector<32x128xf32>
    %6 = arith.addf %3, %5 : vector<32x128xf32>
    %c0_6 = arith.constant 0 : index
    %c0_7 = arith.constant 0 : index
    %c0_8 = arith.constant 0 : index
    %7 = vector.load %arg5[%c0_6, %c0_7, %c0_8] : memref<1x1x128xf32, #tpu.memory_space<vmem>>, vector<1x1x128xf32>
    %8 = vector.shape_cast %7 : vector<1x1x128xf32> to vector<1x128xf32>
    %9 = vector.broadcast %8 : vector<1x128xf32> to vector<32x128xf32>
    %10 = arith.mulf %6, %9 : vector<32x128xf32>
    %c0_9 = arith.constant 0 : index
    %c0_10 = arith.constant 0 : index
    %c0_11 = arith.constant 0 : index
    %11 = vector.load %arg6[%c0_9, %c0_10, %c0_11] : memref<1x32x128xf32, #tpu.memory_space<vmem>>, vector<1x32x128xf32>
    %12 = vector.shape_cast %11 : vector<1x32x128xf32> to vector<32x128xf32>
    %13 = vector.shape_cast %10 : vector<32x128xf32> to vector<1x32x128xf32>
    tpu.vector_store %arg6[%c0_9, %c0_10, %c0_11], %13 {strides = array<i32>} : memref<1x32x128xf32, #tpu.memory_space<vmem>>, vector<1x32x128xf32>,
    return
  }
  func.func @transform_0(%arg0: i32, %arg1: i32) -> (i32, i32, i32) {
    %c0_i32 = arith.constant 0 : i32
    %c0_i32_0 = arith.constant 0 : i32
    return %arg0, %c0_i32, %arg1 : i32, i32, i32
  }
  func.func @transform_1(%arg0: i32, %arg1: i32) -> (i32, i32) {
    %c0_i32 = arith.constant 0 : i32
    %c0_i32_0 = arith.constant 0 : i32
    %c0_i32_1 = arith.constant 0 : i32
    return %c0_i32, %c0_i32_0 : i32, i32
  }
  func.func @transform_2(%arg0: i32, %arg1: i32) -> (i32, i32) {
    %c0_i32 = arith.constant 0 : i32
    %c0_i32_0 = arith.constant 0 : i32
    %c0_i32_1 = arith.constant 0 : i32
    return %c0_i32, %c0_i32_0 : i32, i32
  }
  func.func @transform_3(%arg0: i32, %arg1: i32) -> (i32, i32, i32) {
    %c0_i32 = arith.constant 0 : i32
    %c0_i32_0 = arith.constant 0 : i32
    return %arg0, %c0_i32, %arg1 : i32, i32, i32
  }
  func.func @transform_4(%arg0: i32, %arg1: i32) -> (i32, i32, i32) {
    %c0_i32 = arith.constant 0 : i32
    %c0_i32_0 = arith.constant 0 : i32
    return %arg0, %c0_i32, %arg1 : i32, i32, i32
  }
}

</mosaic_0001>

<bundles_post_ra>
// kernel: tpu_custom_call.1
= control target key start
LH: loop header
LB: loop body
LE: loop exit
PB: predicated region body
PF: predicated region fallthrough
CT: control target
= control target key end

     0   :  { %9 = vsyncpa [#allocation3], 0  ;;  %s839_s0 = inlined_call_operand.vmem [shape: f32[2,8,128], index: 0, kind: input, shape index: {}]   ;;  %s840_s1 = inlined_call_operand.vmem [shape: f32[32,8], index: 1, kind: input, shape index: {}]   ;;  %s841_s2 = inlined_call_operand.vmem [shape: f32[32,1], index: 2, kind: input, shape index: {}]   ;;  %s842_s3 = inlined_call_operand.vmem [shape: f32[2,1,128], index: 3, kind: input, shape index: {}]   ;;  %s843_s4 = inlined_call_operand.hbm [shape: f32[2,32,128], index: 4, kind: output, shape index: {}]  }
   0x1   :  { %11 = vsyncpa [#allocation3 + $0x1], 0  ;;  %s689_s15 = smov 0   ;;  %s691_s16 = smov 0  }
   0x2   :  { %s693_s17 = smov 0   ;;  %s695_s18 = smov 0  }
   0x3   :  { %s697_s19 = smov 0   ;;  %s699_s20 = smov 0  }
   0x4 LB: > { %s487_s21 = sadd.s32 4294967295, %s658_s20   ;;  %s488_s22 = sadd.s32 4294967294, %s658_s20   ;;  %s658_s20 = sphi %s699_s20, %s17_s20   ;;  %s654_s19 = sphi %s697_s19, %s850_s19   ;;  %s650_s18 = sphi %s695_s18, %s849_s18   ;;  %s646_s17 = sphi %s693_s17, %s848_s17   ;;  %s642_s16 = sphi %s691_s16, %s847_s16   ;;  %s638_s15 = sphi %s689_s15, %s846_s15  }
   0x5   : > { %s29_s23 = sadd.s32 1, %s654_s19  ;;  %s136_s24 = sadd.s32 1, %s646_s17 }
   0x6   : > { %p31_p0 = scmp.ge.s32.totalorder %s29_s23, 2  ;;  %p146_p1 = scmp.ne.s32.totalorder %s646_s17, %s642_s16 }
   0x7   : > { %p147_p2 = scmp.eq.s32.totalorder %s487_s21, 1  ;;  %p152_p3 = scmp.ne.s32.totalorder %s642_s16, %s638_s15 }
   0x8   : > { %s852_s23 = smov (%p31_p0, %s29_s23), 0  ;;  %p153_p5 = scmp.eq.s32.totalorder %s488_s22, 1 }
   0x9   : > { %p729_p4 = por %p147_p2, %p146_p1  ;;  %s131_s26 = ssub.s32 %s654_s19, %s852_s23 }
   0xa   : > { %p491_p6 = scmp.ge.s32.totalorder %s658_s20, 1  ;;  %p134_p7 = scmp.eq.s32.totalorder %s131_s26, 0 }
   0xb   : > { %p736_p8 = por %p153_p5, %p152_p3  ;;  %p196_p9 = scmp.lt.s32.totalorder %s658_s20, 3 }
   0xc   : > { %s742_s28 = scalar_select %p134_p7, %s646_s17, %s136_s24  }
   0xd   : > { %p197_p10 = pnand %p491_p6, %p196_p9 }
   0xe   : > { %p230_p11 = scmp.lt.s32.totalorder (!%p197_p10), %s650_s18, 1  ;;  %v243_v0 = vld [vmem:[%s840_s1] sm:$0xff] (!%p197_p10)  ;;  %vm272_vm0 = vcmask (!%p197_p10), 64512   ;;  %v245_v1 = vld [vmem:[%s840_s1 + $0x10] sm:$0xff] (!%p197_p10)  ;;  %v660_v4 = vmov (!%p197_p10), 0   ;;  %v244_v6 = vld [vmem:[%s840_s1 + $0x8] sm:$0xff] (!%p197_p10) }
   0xf   : > { %200 = sbr.rel (%p197_p10) target bundleno = 261 (0x105), region = 36  ;;  %512 = vmatprep.mubr.msk.f32.mxu0 (!%p197_p10), %vm272_vm0, %v243_v0  ;;  %515 = vmatprep.mubr.msk.f32.mxu1 (!%p197_p10), %vm272_vm0, %v245_v1  ;;  %v250_v2 = vld [vmem:[%s841_s2 + $0x10] sm:$0xff] (!%p197_p10)  ;;  %v248_v3 = vld [vmem:[%s841_s2] sm:$0xff] (!%p197_p10)  ;;  %v246_v7 = vld [vmem:[%s840_s1 + $0x18] sm:$0xff] (!%p197_p10)  ;;  %s227_s8 = sand.u32 (!%p197_p10), 1, %s642_s16  }
  0x10   : > { %579 = vset.pattern.permute.xlu1 (!%p197_p10), %v660_v4  ;;  %578 = vset.pattern.permute.xlu0 (!%p197_p10), %v660_v4  ;;  %v251_v8 = vld [vmem:[%s841_s2 + $0x18] sm:$0xff] (!%p197_p10)  ;;  %v249_v9 = vld [vmem:[%s841_s2 + $0x8] sm:$0xff] (!%p197_p10)  ;;  %s492_s9 = sshll.u32 (!%p197_p10), %s227_s8, 5  ;;  %s504_s22 = sshll.u32 (!%p197_p10), %s650_s18, 9 }
  0x11   : > { %264 = vperm.xlu1 (!%p197_p10), %579, %v250_v2   ;;  %254 = vperm.xlu0 (!%p197_p10), %578, %v248_v3   ;;  %s229_s14 = scalar_lea.vmem (!%p197_p10), [#allocation2], %s492_s9  ;;  %s791_s26 = scalar_lea.hbm (!%p197_p10), %s843_s4, %s504_s22 }
  0x12   : > { %s661_s30 = smov (!%p197_p10), [#allocation2]  }
  0x13   : > { %s584_s5 = sshll.u32 (!%p197_p10), %s661_s30, 4  ;;  %s585_s5 = int_to_ptr.vmem [resolvable:$false] %s584_s5 }
  0x14   : > { %s586_s6 = scalar_lea.vmem (!%p197_p10), %s585_s5, 1024 }
  0x15   : > { %269 = vperm.xlu1 (!%p197_p10), %579, %v251_v8   ;;  %259 = vperm.xlu0 (!%p197_p10), %578, %v249_v9  }
  0x16   : > { %s760_s11 = scalar_select %p230_p11, %s650_s18, 1 }
  0x17   : > { %s793_s18 = scalar_lea.sflag [#allocation3], %s227_s8 }
  0x18   : > { %s493_s12 = sshll.u32 %s760_s11, 3  ;;  %s242_s13 = scalar_lea.vmem %s842_s3, %s760_s11 }
  0x19   : > { %s236_s21 = scalar_lea.vmem %s839_s0, %s493_s12  ;;  %v498_v15 = vld [vmem:[%s242_s13] ss:$0 sm:$0xff] }
  0x1a   : > { %v247_v5 = vld [vmem:[%s236_s21] sm:$0xff]  ;;  %s400_s21 = sshll.u32 %s229_s14, 4  ;;  %s786_s21 = int_to_ptr.vmem [resolvable:$true] %s400_s21 }
  0x1b   : > { %510 = vmatprep.subr.mxu0 %v247_v5  ;;  %518 = vmatprep.subr.mxu1 %v247_v5  ;;  %s580_s29 = scalar_lea.vmem %s786_s21, 512  ;;  %p587_p1 = scmp.lt.s32.totalorder %s786_s21, %s585_s5 }
  0x1c   : > { %511 = vmatpush3.msra.mxu0 %v247_v5  ;;  %519 = vmatpush3.msra.mxu1 %v247_v5  ;;  %p581_p12 = scmp.ne.s32.totalorder %s786_s21, %s580_s29  ;;  %p588_p2 = scmp.lt.s32.totalorder %s586_s6, %s580_s29 }
  0x1d   : > { %513 = vmatmul.mubr.msk.f32.vlgmr.msra.gmra.mrb[0].mxu0 %vm272_vm0, %v244_v6  ;;  %516 = vmatmul.mubr.msk.f32.vlgmr.msra.gmra.mrb[0].mxu1 %vm272_vm0, %v246_v7 }
  0x1e   : > { %p582_p13 = pnand %p581_p12, %p729_p4  ;;  %p589_p3 = por %p588_p2, %p587_p1 }
  0x20   : > { %p583_p0 = pneg %p582_p13 }
  0x22   : > { %p590_p5 = pnand %p589_p3, %p583_p0 }
  0x90   : > { %v265_v10 = vpop.permute.xlu1 %264  ;;  %v255_v11 = vpop.permute.xlu0 %254 }
  0x94   : > { %v270_v12 = vpop.permute.xlu1 %269  ;;  %v260_v13 = vpop.permute.xlu0 %259 }
  0xf0   : > { %v514_v14 = vpop.f32.mrb[0].mxu0  ;;  %v517_v16 = vpop.f32.mrb[0].mxu1 }
  0xf1   : > { %v357_v17 = vadd.f32 %v514_v14, %v260_v13  ;;  %v367_v18 = vadd.f32 %v517_v16, %v270_v12  ;;  %v351_v19 = vpop.f32.mrb[1].mxu0  ;;  %v361_v20 = vpop.f32.mrb[1].mxu1 }
  0xf2   : > { %v352_v21 = vadd.f32 %v351_v19, %v255_v11  ;;  %v362_v22 = vadd.f32 %v361_v20, %v265_v10 }
  0xf3   : > { %v378_v23 = vmul.f32 %v498_v15, %v357_v17  ;;  %v380_v24 = vmul.f32 %v498_v15, %v367_v18 }
  0xf4   : > { %v377_v25 = vmul.f32 %v498_v15, %v352_v21  ;;  %v379_v26 = vmul.f32 %v498_v15, %v362_v22 }
  0xf5   : > { %382 = vst [vmem:[%s229_s14 + $0x8] sm:$0xff] %v378_v23  ;;  %384 = vst [vmem:[%s229_s14 + $0x18] sm:$0xff] %v380_v24 }
  0xf6   : > { %381 = vst [vmem:[%s229_s14] sm:$0xff] %v377_v25  ;;  %383 = vst [vmem:[%s229_s14 + $0x10] sm:$0xff] %v379_v26 }
  0xf7   : > { %593 = shalt.err (!%p590_p5)
}
  0xf8   : > { %s594_s7 = scalar_lea.hbm %s791_s26, 512  ;;  %s598_s10 = scalar_lea.hbm %s843_s4, 1024 }
  0xf9   : > { %p595_p6 = scmp.ne.s32.totalorder %s791_s26, %s594_s7  ;;  %p599_p10 = scmp.lt.u32.totalorder %s791_s26, %s843_s4 }
  0xfa   : > { %p600_p11 = scmp.lt.u32.totalorder %s598_s10, %s594_s7  ;;  %p602_p13 = scmp.lt.u32.totalorder %s594_s7, %s791_s26 }
  0xfb   : > { %p596_p7 = pnand %p595_p6, %p729_p4 }
  0xfc   : > { %p601_p12 = por %p600_p11, %p599_p10 }
  0xfd   : > { %p597_p9 = pneg %p596_p7 }
  0xfe   : > { %p603_p0 = por %p602_p13, %p601_p12 }
 0x100   : > { %p604_p1 = pnand %p603_p0, %p597_p9 }
 0x102   : > { %607 = shalt.err (!%p604_p1)
}
 0x103   : > { %s662_s14 = smov 128   ;;  %s663_s22 = smov 8  }
 0x104   : > { %520 = dma.vmem_to_hbm [thread:$0]  (%p729_p4), %s786_s21, 512, %s791_s26, %s793_s18, %s662_s14, %s662_s14, %s663_s22  }
 0x105 PF: > { %p526_p2 = scmp.ge.s32.totalorder %s658_s20, 2  ;;  %s415_s11 = sand.u32 1, %s638_s15  }
 0x106   : > { %s416_s24 = scalar_lea.sflag [#allocation3], %s415_s11 }
 0x107   : > { %p523_p3 = pnand %p526_p2, %p736_p8 }
 0x109   : > { %633 = dma.done.wait (!%p523_p3), %s416_s24, 512  }
 0x10a   : > { %635 = vsyncadd (!%p523_p3), %s416_s24, 4294966784  ;;  %s17_s20 = sadd.s32 1, %s658_s20   ;;  %s846_s15 = smov %s642_s16 }
 0x10b   : > { %p14_p5 = scmp.ge.s32.totalorder %s17_s20, 4   ;;  %s847_s16 = smov %s646_s17 }
 0x10c   : > { %s848_s17 = smov %s742_s28  ;;  %s849_s18 = smov %s654_s19 }
 0x10d   : > { %s850_s19 = smov %s852_s23  ;;  %16 = sbr.rel (!%p14_p5) target bundleno = 4 (0x4), region = 74 }
 0x114   :  { %421 = vsyncpa [#allocation3], 1 }
 0x115   :  { %423 = vsyncpa [#allocation3 + $0x1], 1 }

</bundles_post_ra>
